<compile_context>
chip_gen: v7x
topology: tpu7x:2x2x1
jax: 0.10.0
libtpu: 0.0.40
codegen_flags: <defaults>
</compile_context>

<pallas_src>
import numpy as np
import jax
import jax.numpy as jnp
from jax import lax
from jax.experimental import pallas as pl
from jax.experimental.pallas import tpu as pltpu


def _cdiv(a, b):
    return -(-a // b)


def _round_up(a, b):
    return _cdiv(a, b) * b


def features_linear_kernel(idx_ref, table_ref, bias_ref, out_ref):
    # idx_ref:   VMEM (F, bb)  int32  -- pre-offset indices for this batch tile
    #                                    (batch on the 128-lane axis)
    # table_ref: VMEM (D, V)   native -- transposed embedding table, resident
    # bias_ref:  VMEM (D, 1)   f32    -- bias, resident
    # out_ref:   VMEM (D, bb)  f32    -- transposed output tile (lane-dense)
    num_fields, bb = idx_ref.shape
    _, vocab = table_ref.shape

    idx = idx_ref[...]                                            # (F, bb) int32
    row_ids = lax.broadcasted_iota(jnp.int32, (vocab, bb), 0)     # (V, bb)

    # Multiplicity of every table row within this tile:
    #   counts[v, b] = #{f : idx[f, b] == v}
    # Padded / out-of-range indices match nothing -> contribute 0 (no OOB reads).
    counts = (idx[0:1, :] == row_ids).astype(jnp.float32)
    for f in range(1, num_fields):                                # F small & static -> unrolled
        counts += (idx[f:f + 1, :] == row_ids).astype(jnp.float32)

    # One MXU matmul performs the gather + sum-over-fields for the whole tile:
    #   out_T = table_T @ counts  -> (D, bb)
    tbl = table_ref[...]
    if tbl.dtype == jnp.float32:
        acc = jnp.dot(tbl, counts, preferred_element_type=jnp.float32)
    else:
        # Keep low-precision tables (e.g. bf16) native on the MXU; counts <= F
        # are exactly representable.
        acc = jnp.dot(tbl, counts.astype(tbl.dtype),
                      preferred_element_type=jnp.float32)

    out_ref[...] = acc + bias_ref[...]                            # bias broadcasts over lanes


def _choose_batch_tile(B, V, block_b):
    # Batch lives on the lane axis, so tiles are multiples of 128.
    # Keep the O(V*bb) one-hot working set under ~8 MiB of VMEM.
    cap = max(128, (((8 << 20) // (4 * max(V, 1))) // 128) * 128)
    bb = min(_round_up(min(block_b, B), 128), cap)
    n = _cdiv(B, bb)
    if n > 1 and n % 2:
        # Prefer an even tile count so the two TensorCores of a v7x megacore balance.
        bb = min(_round_up(_cdiv(B, n + 1), 128), cap)
        n = _cdiv(B, bb)
    return bb, n


def features_linear(x, offsets, table, bias, *, block_b=2048):
    """x: (B, F) int, offsets: (F,) int, table: (V, D), bias: (D,) -> (B, D) f32."""
    B, F = x.shape
    V, D = table.shape

    bb, n_tiles = _choose_batch_tile(B, V, block_b)
    B_pad = n_tiles * bb

    # Pre-offset on the host side (removes the per-row scalar add from the kernel)
    # and transpose so batch lands on lanes inside the kernel.
    idx = x.astype(jnp.int32) + offsets.astype(jnp.int32)[None, :]
    if B_pad != B:
        idx = jnp.pad(idx, ((0, B_pad - B), (0, 0)))              # padded rows sliced off below
    idx_T = idx.T                                                 # (F, B_pad)

    table_T = jnp.swapaxes(table, 0, 1)                           # (D, V), native dtype
    bias_T = bias.astype(jnp.float32).reshape(D, 1)

    itemsize = jnp.dtype(table.dtype).itemsize
    vmem_needed = (2 * D * V * itemsize        # resident table (double-buffered by default)
                   + 2 * F * bb * 4            # pipelined index tiles
                   + 2 * D * bb * 4            # pipelined output tiles
                   + 2 * V * bb * 4            # one-hot counts + iota working set
                   + (2 << 20))
    # Cap below v7x's 64 MiB/TC physical VMEM; v5e/v6e have 128 MiB so this is safe everywhere.
    vmem_limit = int(min(48 << 20, max(8 << 20, vmem_needed)))

    cost = pl.CostEstimate(
        flops=2 * B_pad * V * D + B_pad * V * F,
        transcendentals=0,
        bytes_accessed=B_pad * F * 4 + V * D * itemsize + B_pad * D * 4 + D * 4,
    )

    out_T = pl.pallas_call(
        features_linear_kernel,
        out_shape=jax.ShapeDtypeStruct((D, B_pad), jnp.float32),
        grid=(n_tiles,),
        in_specs=[
            pl.BlockSpec((F, bb), lambda i: (0, i)),              # per-tile indices (pipelined)
            pl.BlockSpec((D, V), lambda i: (0, 0)),               # table: resident across grid
            pl.BlockSpec((D, 1), lambda i: (0, 0)),               # bias: resident
        ],
        out_specs=pl.BlockSpec((D, bb), lambda i: (0, i)),
        compiler_params=pltpu.CompilerParams(
            dimension_semantics=("parallel",),
            vmem_limit_bytes=vmem_limit,
        ),
        cost_estimate=cost,
    )(idx_T, table_T, bias_T)

    return out_T[:, :B].T                                         # back to (B, D)


if __name__ == "__main__":
    # Deterministic synthetic setup (mirrors FeaturesLinear.__init__).
    field_dims = np.array([3, 5, 7, 9], dtype=np.int64)   # num_fields = 4
    output_dim = 1
    vocab = int(field_dims.sum())                          # 24
    num_fields = len(field_dims)
    batch = 8

    key = jax.random.PRNGKey(0)
    k_emb, k_x = jax.random.split(key)

    # Embedding weight (deterministic init) and zero bias, as in the module.
    table = jax.random.normal(k_emb, (vocab, output_dim), dtype=jnp.float32) * 0.01
    bias = jnp.zeros((output_dim,), dtype=jnp.float32)

    # offsets = (0, *cumsum(field_dims)[:-1])
    offsets_np = np.array((0, *np.cumsum(field_dims)[:-1]), dtype=np.int32)
    offsets = jnp.asarray(offsets_np)                       # (num_fields,)

    # Indices: each field f draws uniformly from [0, field_dims[f]).
    cols = []
    keys = jax.random.split(k_x, num_fields)
    for f in range(num_fields):
        cols.append(jax.random.randint(keys[f], (batch, 1), 0, int(field_dims[f]),
                                       dtype=jnp.int32))
    x = jnp.concatenate(cols, axis=1)                       # (batch, num_fields) int32

    out = features_linear(x, offsets, table, bias)
    out = jax.block_until_ready(out)

    # Pure-JAX reference check (embedding take + sum over fields + bias).
    ref = jnp.take(table, x + offsets[None, :], axis=0).sum(axis=1) + bias[None, :]
    np.testing.assert_allclose(np.asarray(out), np.asarray(ref), rtol=1e-5, atol=1e-6)

    print("KERNEL_OK")
</pallas_src>

<mosaic_0001>
module attributes {stable_mosaic.version = 11 : i64} {
  func.func @features_linear_kernel(%arg0: i32, %arg1: memref<4x128xi32, #tpu.memory_space<vmem>>, %arg2: memref<1x24xf32, #tpu.memory_space<vmem>>, %arg3: memref<1x1xf32, #tpu.memory_space<vmem>>, %arg4: memref<1x128xf32, #tpu.memory_space<vmem>>) attributes {dimension_semantics = [#tpu.dimension_semantics<parallel>], iteration_bounds = array<i64: 1>, scalar_prefetch = 0 : i64, scratch_operands = 0 : i64, tpu.core_type = #tpu.core_type<tc>, window_params = [{transform_indices = @transform_0, window_bounds = array<i64: 4, 128>}, {pipeline_mode = #tpu.pipeline_mode<synchronous>, transform_indices = @transform_1, window_bounds = array<i64: 1, 24>}, {pipeline_mode = #tpu.pipeline_mode<synchronous>, transform_indices = @transform_2, window_bounds = array<i64: 1, 1>}, {transform_indices = @transform_3, window_bounds = array<i64: 1, 128>}]} {
    %c0 = arith.constant 0 : index
    %c0_0 = arith.constant 0 : index
    %0 = vector.load %arg1[%c0, %c0_0] : memref<4x128xi32, #tpu.memory_space<vmem>>, vector<4x128xi32>
    %1 = tpu.iota {dimensions = array<i32: 0>} : vector<24x128xi32>
    %2 = vector.extract_strided_slice %0 {offsets = [0, 0], sizes = [1, 128], strides = [1, 1]} : vector<4x128xi32> to vector<1x128xi32>
    %3 = vector.broadcast %2 : vector<1x128xi32> to vector<24x128xi32>
    %4 = arith.cmpi eq, %3, %1 : vector<24x128xi32>
    %5 = arith.extui %4 : vector<24x128xi1> to vector<24x128xi32>
    %6 = arith.sitofp %5 : vector<24x128xi32> to vector<24x128xf32>
    %7 = vector.extract_strided_slice %0 {offsets = [1, 0], sizes = [1, 128], strides = [1, 1]} : vector<4x128xi32> to vector<1x128xi32>
    %8 = vector.broadcast %7 : vector<1x128xi32> to vector<24x128xi32>
    %9 = arith.cmpi eq, %8, %1 : vector<24x128xi32>
    %10 = arith.extui %9 : vector<24x128xi1> to vector<24x128xi32>
    %11 = arith.sitofp %10 : vector<24x128xi32> to vector<24x128xf32>
    %12 = arith.addf %6, %11 : vector<24x128xf32>
    %13 = vector.extract_strided_slice %0 {offsets = [2, 0], sizes = [1, 128], strides = [1, 1]} : vector<4x128xi32> to vector<1x128xi32>
    %14 = vector.broadcast %13 : vector<1x128xi32> to vector<24x128xi32>
    %15 = arith.cmpi eq, %14, %1 : vector<24x128xi32>
    %16 = arith.extui %15 : vector<24x128xi1> to vector<24x128xi32>
    %17 = arith.sitofp %16 : vector<24x128xi32> to vector<24x128xf32>
    %18 = arith.addf %12, %17 : vector<24x128xf32>
    %19 = vector.extract_strided_slice %0 {offsets = [3, 0], sizes = [1, 128], strides = [1, 1]} : vector<4x128xi32> to vector<1x128xi32>
    %20 = vector.broadcast %19 : vector<1x128xi32> to vector<24x128xi32>
    %21 = arith.cmpi eq, %20, %1 : vector<24x128xi32>
    %22 = arith.extui %21 : vector<24x128xi1> to vector<24x128xi32>
    %23 = arith.sitofp %22 : vector<24x128xi32> to vector<24x128xf32>
    %24 = arith.addf %18, %23 : vector<24x128xf32>
    %c0_1 = arith.constant 0 : index
    %c0_2 = arith.constant 0 : index
    %25 = vector.load %arg2[%c0_1, %c0_2] : memref<1x24xf32, #tpu.memory_space<vmem>>, vector<1x24xf32>
    %cst = arith.constant dense<0.000000e+00> : vector<1x128xf32>
    %26 = tpu.matmul %25, %24, %cst {dimension_numbers = #tpu.dot_dimension_numbers<[1], [0], [0], [1], [0, 0, 1, 1], [], []>} : vector<1x24xf32>, vector<24x128xf32>, vector<1x128xf32> -> vector<1x128xf32>
    %c0_3 = arith.constant 0 : index
    %c0_4 = arith.constant 0 : index
    %27 = vector.load %arg3[%c0_3, %c0_4] : memref<1x1xf32, #tpu.memory_space<vmem>>, vector<1x1xf32>
    %28 = vector.broadcast %27 : vector<1x1xf32> to vector<1x128xf32>
    %29 = arith.addf %26, %28 : vector<1x128xf32>
    %c0_5 = arith.constant 0 : index
    %c0_6 = arith.constant 0 : index
    %30 = vector.load %arg4[%c0_5, %c0_6] : memref<1x128xf32, #tpu.memory_space<vmem>>, vector<1x128xf32>
    tpu.vector_store %arg4[%c0_5, %c0_6], %29 {strides = array<i32>} : memref<1x128xf32, #tpu.memory_space<vmem>>, vector<1x128xf32>,
    return
  }
  func.func @transform_0(%arg0: i32) -> (i32, i32) {
    %c0_i32 = arith.constant 0 : i32
    %c0_i32_0 = arith.constant 0 : i32
    return %c0_i32, %arg0 : i32, i32
  }
  func.func @transform_1(%arg0: i32) -> (i32, i32) {
    %c0_i32 = arith.constant 0 : i32
    %c0_i32_0 = arith.constant 0 : i32
    %c0_i32_1 = arith.constant 0 : i32
    return %c0_i32, %c0_i32_0 : i32, i32
  }
  func.func @transform_2(%arg0: i32) -> (i32, i32) {
    %c0_i32 = arith.constant 0 : i32
    %c0_i32_0 = arith.constant 0 : i32
    %c0_i32_1 = arith.constant 0 : i32
    return %c0_i32, %c0_i32_0 : i32, i32
  }
  func.func @transform_3(%arg0: i32) -> (i32, i32) {
    %c0_i32 = arith.constant 0 : i32
    %c0_i32_0 = arith.constant 0 : i32
    return %c0_i32, %arg0 : i32, i32
  }
}

</mosaic_0001>

<bundles_post_ra>
// kernel: tpu_custom_call.1
= control target key start
LH: loop header
LB: loop body
LE: loop exit
PB: predicated region body
PF: predicated region fallthrough
CT: control target
= control target key end

     0   :  { %s336_s0 = inlined_call_operand.hbm [shape: s32[4,128], index: 0, kind: input, shape index: {}]   ;;  %s337_s1 = inlined_call_operand.vmem [shape: f32[1,24], index: 1, kind: input, shape index: {}]   ;;  %s338_s2 = inlined_call_operand.<no memory space> [shape: f32[1,1], index: 2, kind: input, shape index: {}]   ;;  %s339_s3 = inlined_call_operand.hbm [shape: f32[1,128], index: 3, kind: output, shape index: {}]  }
   0x1   :  { %v8_v0 = vstv %s338_s2 }
   0x2   :  { %9 = vst [vmem:[#allocation2] sm:$0x1] %v8_v0 }
   0x3   :  { %10 = vsyncpa [#allocation4], 0 }
   0x4   :  { %11 = vsyncpa [#allocation5], 0  ;;  %s280_s14 = smov [#allocation3]   ;;  %s232_s18 = scalar_lea.hbm %s336_s0, 64 }
   0x5   :  { %s18_s15 = sshll.u32 %s280_s14, 4  ;;  %p233_p0 = scmp.ne.s32.totalorder %s336_s0, %s232_s18  ;;  %s19_s15 = int_to_ptr.vmem [resolvable:$true] %s18_s15 }
   0x6   :  { %p236_p1 = scmp.lt.u32.totalorder %s232_s18, %s336_s0 }
   0x8   :  { %p238_p2 = pnand %p236_p1, %p233_p0 }
   0xa   :  { %241 = shalt.err (!%p238_p2)
}
   0xb   :  { %s242_s2 = scalar_lea.vmem %s19_s15, 64  ;;  %p247_p4 = scmp.lt.s32.totalorder %s19_s15, %s19_s15 }
   0xc   :  { %p243_p3 = scmp.ne.s32.totalorder %s19_s15, %s242_s2  ;;  %p248_p5 = scmp.lt.s32.totalorder %s242_s2, %s242_s2 }
   0xe   :  { %p249_p6 = por %p248_p5, %p247_p4 }
  0x10   :  { %p250_p7 = pnand %p249_p6, %p243_p3 }
  0x12   :  { %253 = shalt.err (!%p250_p7)
}
  0x13   :  { %21 = dma.hbm_to_vmem [thread:$0]  %s336_s0, 64, %s19_s15, [#allocation4]  }
  0x14   :  { %276 = dma.done.wait [#allocation4], 64  }
  0x15   :  { %277 = vsyncadd [#allocation4], 4294967232  ;;  %v30_v1 = vlaneseq  ;;  %v281_v2 = vmov 0.0|0.0   ;;  %vm282_vm0 = vmmov 0   ;;  %v283_v3 = vmov 0.0   ;;  %s285_s26 = smov [#allocation6]  }
  0x16   :  { %222 = vmatprep.subr.bf16.mxu0 %v281_v2  ;;  %219 = vmatprep.mubr.msk.f32.mxu0 %vm282_vm0, %v283_v3  ;;  %v284_v5 = vmov 0   ;;  %v29_v11 = vld [vmem:[#allocation3] sm:$0xf]  ;;  %v96_v12 = vld [vmem:[#allocation2] sm:$0x1]  ;;  %vm106_vm13 = vcmask 195584  }
  0x17   :  { %v31_v4 = vshrl.u32 %v30_v1, 7  ;;  %231 = vset.pattern.permute.xlu0 %v284_v5  ;;  %v95_v40 = vld [vmem:[%s337_s1] sm:$0x1]  ;;  %s187_s27 = sshll.u32 %s285_s26, 4  ;;  %s188_s27 = int_to_ptr.vmem [resolvable:$true] %s187_s27 }
  0x18   :  { %99 = vperm.xlu0 %231, %v96_v12   ;;  %s254_s28 = scalar_lea.vmem %s188_s27, 16  ;;  %s258_s29 = scalar_lea.vmem %s188_s27, 32 }
  0x19   :  { %v36_v6 = vsub.s32 0, %v31_v4  ;;  %v49_v7 = vsub.s32 1, %v31_v4  ;;  %v65_v8 = vsub.s32 2, %v31_v4  ;;  %v81_v9 = vsub.s32 3, %v31_v4  ;;  %p255_p8 = scmp.ne.s32.totalorder %s188_s27, %s254_s28  ;;  %p259_p9 = scmp.lt.s32.totalorder %s188_s27, %s188_s27 }
  0x1a   :  { %v32_v10 = vadd.s32 8, %v31_v4  ;;  %v33_v17 = vadd.s32 16, %v31_v4  ;;  %p260_p10 = scmp.lt.s32.totalorder %s258_s29, %s254_s28 }
  0x1b   :  { %v37_v13 = vrot.slane %v29_v11, %v36_v6  ;;  %v50_v14 = vrot.slane %v29_v11, %v49_v7  ;;  %v66_v15 = vrot.slane %v29_v11, %v65_v8  ;;  %v82_v16 = vrot.slane %v29_v11, %v81_v9 }
  0x1c   :  { %p261_p11 = por %p260_p10, %p259_p9 }
  0x1d   :  { %vm38_vm1 = vcmp.eq.s32.totalorder %v37_v13, %v31_v4  ;;  %vm39_vm2 = vcmp.eq.s32.totalorder %v37_v13, %v32_v10  ;;  %vm51_vm3 = vcmp.eq.s32.totalorder %v50_v14, %v31_v4  ;;  %vm52_vm4 = vcmp.eq.s32.totalorder %v50_v14, %v32_v10 }
  0x1e   :  { %v196_v18 = vsel %vm38_vm1, 1.0, %v283_v3  ;;  %v197_v19 = vsel %vm39_vm2, 1.0, %v283_v3  ;;  %v199_v20 = vsel %vm51_vm3, 1.0, %v283_v3  ;;  %v200_v21 = vsel %vm52_vm4, 1.0, %v283_v3  ;;  %p262_p12 = pnand %p261_p11, %p255_p8 }
  0x1f   :  { %v60_v22 = vadd.f32 %v199_v20, %v196_v18  ;;  %v61_v23 = vadd.f32 %v200_v21, %v197_v19  ;;  %vm67_vm5 = vcmp.eq.s32.totalorder %v66_v15, %v31_v4  ;;  %vm68_vm6 = vcmp.eq.s32.totalorder %v66_v15, %v32_v10 }
  0x20   :  { %v202_v24 = vsel %vm67_vm5, 1.0, %v283_v3  ;;  %v203_v25 = vsel %vm68_vm6, 1.0, %v283_v3  ;;  %vm83_vm7 = vcmp.eq.s32.totalorder %v82_v16, %v31_v4  ;;  %vm84_vm8 = vcmp.eq.s32.totalorder %v82_v16, %v32_v10 }
  0x21   :  { %v76_v26 = vadd.f32 %v202_v24, %v60_v22  ;;  %v77_v27 = vadd.f32 %v203_v25, %v61_v23  ;;  %v205_v28 = vsel %vm83_vm7, 1.0, %v283_v3  ;;  %v206_v29 = vsel %vm84_vm8, 1.0, %v283_v3 }
  0x22   :  { %vm40_vm9 = vcmp.eq.s32.totalorder %v37_v13, %v33_v17  ;;  %vm53_vm10 = vcmp.eq.s32.totalorder %v50_v14, %v33_v17  ;;  %vm69_vm11 = vcmp.eq.s32.totalorder %v66_v15, %v33_v17  ;;  %vm85_vm12 = vcmp.eq.s32.totalorder %v82_v16, %v33_v17 }
  0x23   :  { %v92_v30 = vadd.f32 %v205_v28, %v76_v26  ;;  %v93_v31 = vadd.f32 %v206_v29, %v77_v27  ;;  %v198_v32 = vsel %vm40_vm9, 1.0, %v283_v3  ;;  %v201_v33 = vsel %vm53_vm10, 1.0, %v283_v3 }
  0x24   :  { %v62_v34 = vadd.f32 %v201_v33, %v198_v32  ;;  %v204_v35 = vsel %vm69_vm11, 1.0, %v283_v3  ;;  %v207_v37 = vsel %vm85_vm12, 1.0, %v283_v3 }
  0x25   :  { %v223_v36 = vpack.c.bf16 %v93_v31, %v92_v30 }
  0x26   :  { %v78_v38 = vadd.f32 %v204_v35, %v62_v34 }
  0x27   :  { %224 = vmatpush3.bf16.msra.mxu0 %v223_v36 }
  0x28   :  { %217 = vmatprep.subr.mxu0 %v283_v3  ;;  %v94_v39 = vadd.f32 %v207_v37, %v78_v38 }
  0x2b   :  { %218 = vmatpush3.msra.mxu0 %v94_v39 }
  0x2c   :  { %220 = vmatmul.mubr.msk.f32.vlgmr.msra.gmra.mrb[0].mxu0 %vm106_vm13, %v95_v40 }
  0x97   :  { %v100_v41 = vpop.permute.xlu0 %99 }
  0x98   :  { %v105_v42 = vrot.slane %v100_v41, %v36_v6 }
  0xff   :  { %v176_v43 = vpop.f32.mrb[0].mxu0 }
 0x100   :  { %v177_v44 = vadd.f32 %v176_v43, %v105_v42  ;;  %v221_v45 = vpop.f32.mrb[1].mxu0 }
 0x102   :  { %180 = vst [vmem:[#allocation6] sm:$0x1] %v177_v44 }
 0x103   :  { %265 = shalt.err (!%p262_p12)
}
 0x104   :  { %s266_s4 = scalar_lea.hbm %s339_s3, 16 }
 0x105   :  { %p267_p13 = scmp.ne.s32.totalorder %s339_s3, %s266_s4  ;;  %p270_p0 = scmp.lt.u32.totalorder %s266_s4, %s339_s3 }
 0x107   :  { %p272_p1 = pnand %p270_p0, %p267_p13 }
 0x109   :  { %275 = shalt.err (!%p272_p1)
}
 0x10a   :  { %190 = dma.vmem_to_hbm [thread:$0]  %s188_s27, 16, %s339_s3, [#allocation5]  }
 0x10b   :  { %278 = dma.done.wait [#allocation5], 16  }
 0x10c   :  { %279 = vsyncadd [#allocation5], 4294967280 }
 0x10d   :  { %194 = vsyncpa [#allocation4], 1 }
 0x10e   :  { %195 = vsyncpa [#allocation5], 1 }

</bundles_post_ra>
